<compile_context>
chip_gen: v7x
topology: tpu7x:2x2x1
jax: 0.10.0
libtpu: 0.0.40
codegen_flags: <defaults>
</compile_context>

<pallas_src>
import functools

import jax
import jax.numpy as jnp
from jax.experimental import pallas as pl
from jax.experimental.pallas import tpu as pltpu


def _emb_row_index_map(b, st, tok_ref, *, r, ts, seq_len):
    # Gather row `tokens[b, st*ts + r]` of the (V, 1, E) embedding table.
    return (tok_ref[b * seq_len + st * ts + r], 0, 0)


def _embed_pos_dropout_kernel(tok_ref, *refs, ts, use_dropout, keep_thresh,
                              keep_scale):
    # refs layout: [emb_row_0 .. emb_row_{ts-1}, pos, (bits if dropout), out]
    emb_rows = refs[:ts]          # each (1, 1, E) — one gathered embedding row
    pos_ref = refs[ts]            # (ts, E)
    out_ref = refs[-1]            # (1, ts, E)

    x = jnp.concatenate([r[0] for r in emb_rows], axis=0)   # (ts, E)
    y = x + pos_ref[...]                                    # + positional enc.

    if use_dropout:
        bits_ref = refs[ts + 1]                              # (1, ts, E) uint32
        keep = bits_ref[0] < jnp.uint32(keep_thresh)         # integer compare
        y = jnp.where(keep, y * jnp.float32(keep_scale), jnp.float32(0.0))

    out_ref[0] = y.astype(out_ref.dtype)


def make_position_embedding(seq_max_len, embedding_size):
    """Matches the PyTorch buffer construction (float32)."""
    pos = jnp.arange(seq_max_len, dtype=jnp.float32)[:, None]
    div = jnp.power(
        10000.0,
        jnp.arange(0, embedding_size, 2, dtype=jnp.float32) / embedding_size)
    fill = pos / div
    pe = jnp.zeros((seq_max_len, embedding_size), dtype=jnp.float32)
    pe = pe.at[:, ::2].set(jnp.sin(fill))
    pe = pe.at[:, 1::2].set(jnp.cos(fill))
    return pe


def _choose_seq_tile(seq_len):
    # Rows gathered per grid step (also = number of replicated gather specs).
    for ts in (32, 16, 8):
        if seq_len % ts == 0:
            return ts
    return seq_len   # small / odd S: one full sequence per step


def embedding_with_position(tokens, emb_table, pos_table, *, dropout=0.1,
                            train=True, rng_key=None):
    """tokens: (B, S) int; emb_table: (V, E) f32; pos_table: (>=S, E) f32."""
    B, S = tokens.shape
    V, E = emb_table.shape
    ts = _choose_seq_tile(S)
    n_st = S // ts
    use_dropout = bool(train) and float(dropout) > 0.0

    # Token ids: flat int32 in SMEM (scalar prefetch) — they only drive DMAs.
    # Clip guards OOB ids (UB in torch's nn.Embedding anyway).
    tok_flat = jnp.clip(tokens.astype(jnp.int32).reshape(-1), 0, V - 1)

    # (V, 1, E) view so each gathered block is (1, 1, E) with last-two dims
    # equal to the full array dims (layout-constraint friendly).
    emb3 = emb_table.reshape(V, 1, E)
    pos = pos_table[:S].astype(emb_table.dtype)              # same slice as forward()

    inputs = [tok_flat]
    in_specs = []
    for r in range(ts):                                      # ts row-gather specs
        in_specs.append(pl.BlockSpec(
            (1, 1, E),
            functools.partial(_emb_row_index_map, r=r, ts=ts, seq_len=S)))
    inputs += [emb3] * ts
    in_specs.append(pl.BlockSpec((ts, E), lambda b, st, tok: (st, 0)))
    inputs.append(pos)

    keep_thresh = 0
    keep_scale = 1.0
    if use_dropout:
        # TODO(synk): cannot bit-match torch's dropout RNG stream; semantics
        # (Bernoulli keep prob 1-p, scale 1/(1-p)) are reproduced.
        if rng_key is None:
            rng_key = jax.random.PRNGKey(0)
        bits = jax.random.bits(rng_key, (B, S, E), dtype=jnp.uint32)
        keep_thresh = min(int(round((1.0 - float(dropout)) * 2.0 ** 32)),
                          2 ** 32 - 1)
        keep_scale = 1.0 / (1.0 - float(dropout))
        in_specs.append(pl.BlockSpec((1, ts, E), lambda b, st, tok: (b, st, 0)))
        inputs.append(bits)

    kernel = functools.partial(_embed_pos_dropout_kernel, ts=ts,
                               use_dropout=use_dropout,
                               keep_thresh=keep_thresh, keep_scale=keep_scale)

    grid_spec = pltpu.PrefetchScalarGridSpec(
        num_scalar_prefetch=1,                 # token ids -> SMEM
        grid=(B, n_st),
        in_specs=in_specs,
        out_specs=pl.BlockSpec((1, ts, E), lambda b, st, tok: (b, st, 0)),
    )

    return pl.pallas_call(
        kernel,
        out_shape=jax.ShapeDtypeStruct((B, S, E), emb_table.dtype),
        grid_spec=grid_spec,
        compiler_params=pltpu.CompilerParams(
            dimension_semantics=("parallel", "parallel")),   # no cross-step state
    )(*inputs)


if __name__ == "__main__":
    key = jax.random.PRNGKey(0)
    k_tok, k_emb, k_drop = jax.random.split(key, 3)

    B, S = 2, 8
    V, E = 64, 128          # E multiple of 128 -> lane-dense, unmasked stores
    seq_max_len = 64
    dropout_p = 0.1

    tokens = jax.random.randint(k_tok, (B, S), 0, V, dtype=jnp.int32)
    emb_table = jax.random.normal(k_emb, (V, E), dtype=jnp.float32)
    pos_table = make_position_embedding(seq_max_len, E)

    ref = emb_table[tokens] + pos_table[None, :S, :]

    # Eval-mode pass (dropout = identity): exact check vs pure-JAX reference.
    out_eval = embedding_with_position(tokens, emb_table, pos_table,
                                       dropout=dropout_p, train=False)
    out_eval = jax.block_until_ready(out_eval)
    assert out_eval.shape == (B, S, E)
    assert jnp.allclose(out_eval, ref, atol=1e-5, rtol=1e-5), \
        "kernel output mismatch vs reference"

    # Training-mode pass exercising the in-kernel dropout path.
    out_train = embedding_with_position(tokens, emb_table, pos_table,
                                        dropout=dropout_p, train=True,
                                        rng_key=k_drop)
    out_train = jax.block_until_ready(out_train)
    assert out_train.shape == (B, S, E)
    scaled = ref * (1.0 / (1.0 - dropout_p))
    is_dropped = (out_train == 0.0)
    is_kept = jnp.isclose(out_train, scaled, atol=1e-5, rtol=1e-5)
    assert bool(jnp.all(is_dropped | is_kept)), "dropout output not in {0, x/(1-p)}"
    drop_frac = float(jnp.mean(is_dropped.astype(jnp.float32)))
    assert drop_frac < 0.3, f"unexpected dropout fraction {drop_frac}"

    print("KERNEL_OK")
</pallas_src>

<mosaic_0001>
module attributes {stable_mosaic.version = 11 : i64} {
  func.func @_embed_pos_dropout_kernel(%arg0: i32, %arg1: i32, %arg2: memref<16xi32, #tpu.memory_space<smem>>, %arg3: memref<1x1x128xf32, #tpu.memory_space<vmem>>, %arg4: memref<1x1x128xf32, #tpu.memory_space<vmem>>, %arg5: memref<1x1x128xf32, #tpu.memory_space<vmem>>, %arg6: memref<1x1x128xf32, #tpu.memory_space<vmem>>, %arg7: memref<1x1x128xf32, #tpu.memory_space<vmem>>, %arg8: memref<1x1x128xf32, #tpu.memory_space<vmem>>, %arg9: memref<1x1x128xf32, #tpu.memory_space<vmem>>, %arg10: memref<1x1x128xf32, #tpu.memory_space<vmem>>, %arg11: memref<8x128xf32, #tpu.memory_space<vmem>>, %arg12: memref<1x8x128xf32, #tpu.memory_space<vmem>>) attributes {dimension_semantics = [#tpu.dimension_semantics<parallel>, #tpu.dimension_semantics<parallel>], iteration_bounds = array<i64: 2, 1>, scalar_prefetch = 1 : i64, scratch_operands = 0 : i64, tpu.core_type = #tpu.core_type<tc>, window_params = [{transform_indices = @transform_0, window_bounds = array<i64: 1, 1, 128>}, {transform_indices = @transform_1, window_bounds = array<i64: 1, 1, 128>}, {transform_indices = @transform_2, window_bounds = array<i64: 1, 1, 128>}, {transform_indices = @transform_3, window_bounds = array<i64: 1, 1, 128>}, {transform_indices = @transform_4, window_bounds = array<i64: 1, 1, 128>}, {transform_indices = @transform_5, window_bounds = array<i64: 1, 1, 128>}, {transform_indices = @transform_6, window_bounds = array<i64: 1, 1, 128>}, {transform_indices = @transform_7, window_bounds = array<i64: 1, 1, 128>}, {transform_indices = @transform_8, window_bounds = array<i64: 8, 128>}, {transform_indices = @transform_9, window_bounds = array<i64: 1, 8, 128>}]} {
    %c0 = arith.constant 0 : index
    %c0_0 = arith.constant 0 : index
    %c0_1 = arith.constant 0 : index
    %0 = vector.load %arg3[%c0, %c0_0, %c0_1] : memref<1x1x128xf32, #tpu.memory_space<vmem>>, vector<1x1x128xf32>
    %1 = vector.shape_cast %0 : vector<1x1x128xf32> to vector<1x128xf32>
    %c0_2 = arith.constant 0 : index
    %c0_3 = arith.constant 0 : index
    %c0_4 = arith.constant 0 : index
    %2 = vector.load %arg4[%c0_2, %c0_3, %c0_4] : memref<1x1x128xf32, #tpu.memory_space<vmem>>, vector<1x1x128xf32>
    %3 = vector.shape_cast %2 : vector<1x1x128xf32> to vector<1x128xf32>
    %c0_5 = arith.constant 0 : index
    %c0_6 = arith.constant 0 : index
    %c0_7 = arith.constant 0 : index
    %4 = vector.load %arg5[%c0_5, %c0_6, %c0_7] : memref<1x1x128xf32, #tpu.memory_space<vmem>>, vector<1x1x128xf32>
    %5 = vector.shape_cast %4 : vector<1x1x128xf32> to vector<1x128xf32>
    %c0_8 = arith.constant 0 : index
    %c0_9 = arith.constant 0 : index
    %c0_10 = arith.constant 0 : index
    %6 = vector.load %arg6[%c0_8, %c0_9, %c0_10] : memref<1x1x128xf32, #tpu.memory_space<vmem>>, vector<1x1x128xf32>
    %7 = vector.shape_cast %6 : vector<1x1x128xf32> to vector<1x128xf32>
    %c0_11 = arith.constant 0 : index
    %c0_12 = arith.constant 0 : index
    %c0_13 = arith.constant 0 : index
    %8 = vector.load %arg7[%c0_11, %c0_12, %c0_13] : memref<1x1x128xf32, #tpu.memory_space<vmem>>, vector<1x1x128xf32>
    %9 = vector.shape_cast %8 : vector<1x1x128xf32> to vector<1x128xf32>
    %c0_14 = arith.constant 0 : index
    %c0_15 = arith.constant 0 : index
    %c0_16 = arith.constant 0 : index
    %10 = vector.load %arg8[%c0_14, %c0_15, %c0_16] : memref<1x1x128xf32, #tpu.memory_space<vmem>>, vector<1x1x128xf32>
    %11 = vector.shape_cast %10 : vector<1x1x128xf32> to vector<1x128xf32>
    %c0_17 = arith.constant 0 : index
    %c0_18 = arith.constant 0 : index
    %c0_19 = arith.constant 0 : index
    %12 = vector.load %arg9[%c0_17, %c0_18, %c0_19] : memref<1x1x128xf32, #tpu.memory_space<vmem>>, vector<1x1x128xf32>
    %13 = vector.shape_cast %12 : vector<1x1x128xf32> to vector<1x128xf32>
    %c0_20 = arith.constant 0 : index
    %c0_21 = arith.constant 0 : index
    %c0_22 = arith.constant 0 : index
    %14 = vector.load %arg10[%c0_20, %c0_21, %c0_22] : memref<1x1x128xf32, #tpu.memory_space<vmem>>, vector<1x1x128xf32>
    %15 = vector.shape_cast %14 : vector<1x1x128xf32> to vector<1x128xf32>
    %16 = tpu.concatenate %1, %3, %5, %7, %9, %11, %13, %15 in 0 : vector<1x128xf32>, vector<1x128xf32>, vector<1x128xf32>, vector<1x128xf32>, vector<1x128xf32>, vector<1x128xf32>, vector<1x128xf32>, vector<1x128xf32> -> vector<8x128xf32>
    %c0_23 = arith.constant 0 : index
    %c0_24 = arith.constant 0 : index
    %17 = vector.load %arg11[%c0_23, %c0_24] : memref<8x128xf32, #tpu.memory_space<vmem>>, vector<8x128xf32>
    %18 = arith.addf %16, %17 : vector<8x128xf32>
    %c0_25 = arith.constant 0 : index
    %c0_26 = arith.constant 0 : index
    %c0_27 = arith.constant 0 : index
    %19 = vector.load %arg12[%c0_25, %c0_26, %c0_27] : memref<1x8x128xf32, #tpu.memory_space<vmem>>, vector<1x8x128xf32>
    %20 = vector.shape_cast %19 : vector<1x8x128xf32> to vector<8x128xf32>
    %21 = vector.shape_cast %18 : vector<8x128xf32> to vector<1x8x128xf32>
    tpu.vector_store %arg12[%c0_25, %c0_26, %c0_27], %21 {strides = array<i32>} : memref<1x8x128xf32, #tpu.memory_space<vmem>>, vector<1x8x128xf32>,
    return
  }
  func.func @transform_0(%arg0: i32, %arg1: i32, %arg2: memref<16xi32, #tpu.memory_space<smem>>) -> (i32, i32, i32) {
    %c8_i32 = arith.constant 8 : i32
    %0 = arith.muli %arg0, %c8_i32 : i32
    %c8_i32_0 = arith.constant 8 : i32
    %1 = arith.muli %arg1, %c8_i32_0 : i32
    %2 = arith.addi %0, %1 : i32
    %c0_i32 = arith.constant 0 : i32
    %3 = arith.addi %2, %c0_i32 : i32
    %4 = arith.index_cast %3 : i32 to index
    %5 = memref.load %arg2[%4] : memref<16xi32, #tpu.memory_space<smem>>
    %c0_i32_1 = arith.constant 0 : i32
    %c0_i32_2 = arith.constant 0 : i32
    %c0_i32_3 = arith.constant 0 : i32
    return %5, %c0_i32_1, %c0_i32_2 : i32, i32, i32
  }
  func.func @transform_1(%arg0: i32, %arg1: i32, %arg2: memref<16xi32, #tpu.memory_space<smem>>) -> (i32, i32, i32) {
    %c8_i32 = arith.constant 8 : i32
    %0 = arith.muli %arg0, %c8_i32 : i32
    %c8_i32_0 = arith.constant 8 : i32
    %1 = arith.muli %arg1, %c8_i32_0 : i32
    %2 = arith.addi %0, %1 : i32
    %c1_i32 = arith.constant 1 : i32
    %3 = arith.addi %2, %c1_i32 : i32
    %4 = arith.index_cast %3 : i32 to index
    %5 = memref.load %arg2[%4] : memref<16xi32, #tpu.memory_space<smem>>
    %c0_i32 = arith.constant 0 : i32
    %c0_i32_1 = arith.constant 0 : i32
    %c0_i32_2 = arith.constant 0 : i32
    return %5, %c0_i32, %c0_i32_1 : i32, i32, i32
  }
  func.func @transform_2(%arg0: i32, %arg1: i32, %arg2: memref<16xi32, #tpu.memory_space<smem>>) -> (i32, i32, i32) {
    %c8_i32 = arith.constant 8 : i32
    %0 = arith.muli %arg0, %c8_i32 : i32
    %c8_i32_0 = arith.constant 8 : i32
    %1 = arith.muli %arg1, %c8_i32_0 : i32
    %2 = arith.addi %0, %1 : i32
    %c2_i32 = arith.constant 2 : i32
    %3 = arith.addi %2, %c2_i32 : i32
    %4 = arith.index_cast %3 : i32 to index
    %5 = memref.load %arg2[%4] : memref<16xi32, #tpu.memory_space<smem>>
    %c0_i32 = arith.constant 0 : i32
    %c0_i32_1 = arith.constant 0 : i32
    %c0_i32_2 = arith.constant 0 : i32
    return %5, %c0_i32, %c0_i32_1 : i32, i32, i32
  }
  func.func @transform_3(%arg0: i32, %arg1: i32, %arg2: memref<16xi32, #tpu.memory_space<smem>>) -> (i32, i32, i32) {
    %c8_i32 = arith.constant 8 : i32
    %0 = arith.muli %arg0, %c8_i32 : i32
    %c8_i32_0 = arith.constant 8 : i32
    %1 = arith.muli %arg1, %c8_i32_0 : i32
    %2 = arith.addi %0, %1 : i32
    %c3_i32 = arith.constant 3 : i32
    %3 = arith.addi %2, %c3_i32 : i32
    %4 = arith.index_cast %3 : i32 to index
    %5 = memref.load %arg2[%4] : memref<16xi32, #tpu.memory_space<smem>>
    %c0_i32 = arith.constant 0 : i32
    %c0_i32_1 = arith.constant 0 : i32
    %c0_i32_2 = arith.constant 0 : i32
    return %5, %c0_i32, %c0_i32_1 : i32, i32, i32
  }
  func.func @transform_4(%arg0: i32, %arg1: i32, %arg2: memref<16xi32, #tpu.memory_space<smem>>) -> (i32, i32, i32) {
    %c8_i32 = arith.constant 8 : i32
    %0 = arith.muli %arg0, %c8_i32 : i32
    %c8_i32_0 = arith.constant 8 : i32
    %1 = arith.muli %arg1, %c8_i32_0 : i32
    %2 = arith.addi %0, %1 : i32
    %c4_i32 = arith.constant 4 : i32
    %3 = arith.addi %2, %c4_i32 : i32
    %4 = arith.index_cast %3 : i32 to index
    %5 = memref.load %arg2[%4] : memref<16xi32, #tpu.memory_space<smem>>
    %c0_i32 = arith.constant 0 : i32
    %c0_i32_1 = arith.constant 0 : i32
    %c0_i32_2 = arith.constant 0 : i32
    return %5, %c0_i32, %c0_i32_1 : i32, i32, i32
  }
  func.func @transform_5(%arg0: i32, %arg1: i32, %arg2: memref<16xi32, #tpu.memory_space<smem>>) -> (i32, i32, i32) {
    %c8_i32 = arith.constant 8 : i32
    %0 = arith.muli %arg0, %c8_i32 : i32
    %c8_i32_0 = arith.constant 8 : i32
    %1 = arith.muli %arg1, %c8_i32_0 : i32
    %2 = arith.addi %0, %1 : i32
    %c5_i32 = arith.constant 5 : i32
    %3 = arith.addi %2, %c5_i32 : i32
    %4 = arith.index_cast %3 : i32 to index
    %5 = memref.load %arg2[%4] : memref<16xi32, #tpu.memory_space<smem>>
    %c0_i32 = arith.constant 0 : i32
    %c0_i32_1 = arith.constant 0 : i32
    %c0_i32_2 = arith.constant 0 : i32
    return %5, %c0_i32, %c0_i32_1 : i32, i32, i32
  }
  func.func @transform_6(%arg0: i32, %arg1: i32, %arg2: memref<16xi32, #tpu.memory_space<smem>>) -> (i32, i32, i32) {
    %c8_i32 = arith.constant 8 : i32
    %0 = arith.muli %arg0, %c8_i32 : i32
    %c8_i32_0 = arith.constant 8 : i32
    %1 = arith.muli %arg1, %c8_i32_0 : i32
    %2 = arith.addi %0, %1 : i32
    %c6_i32 = arith.constant 6 : i32
    %3 = arith.addi %2, %c6_i32 : i32
    %4 = arith.index_cast %3 : i32 to index
    %5 = memref.load %arg2[%4] : memref<16xi32, #tpu.memory_space<smem>>
    %c0_i32 = arith.constant 0 : i32
    %c0_i32_1 = arith.constant 0 : i32
    %c0_i32_2 = arith.constant 0 : i32
    return %5, %c0_i32, %c0_i32_1 : i32, i32, i32
  }
  func.func @transform_7(%arg0: i32, %arg1: i32, %arg2: memref<16xi32, #tpu.memory_space<smem>>) -> (i32, i32, i32) {
    %c8_i32 = arith.constant 8 : i32
    %0 = arith.muli %arg0, %c8_i32 : i32
    %c8_i32_0 = arith.constant 8 : i32
    %1 = arith.muli %arg1, %c8_i32_0 : i32
    %2 = arith.addi %0, %1 : i32
    %c7_i32 = arith.constant 7 : i32
    %3 = arith.addi %2, %c7_i32 : i32
    %4 = arith.index_cast %3 : i32 to index
    %5 = memref.load %arg2[%4] : memref<16xi32, #tpu.memory_space<smem>>
    %c0_i32 = arith.constant 0 : i32
    %c0_i32_1 = arith.constant 0 : i32
    %c0_i32_2 = arith.constant 0 : i32
    return %5, %c0_i32, %c0_i32_1 : i32, i32, i32
  }
  func.func @transform_8(%arg0: i32, %arg1: i32, %arg2: memref<16xi32, #tpu.memory_space<smem>>) -> (i32, i32) {
    %c0_i32 = arith.constant 0 : i32
    %c0_i32_0 = arith.constant 0 : i32
    return %arg1, %c0_i32 : i32, i32
  }
  func.func @transform_9(%arg0: i32, %arg1: i32, %arg2: memref<16xi32, #tpu.memory_space<smem>>) -> (i32, i32, i32) {
    %c0_i32 = arith.constant 0 : i32
    %c0_i32_0 = arith.constant 0 : i32
    return %arg0, %arg1, %c0_i32 : i32, i32, i32
  }
}

</mosaic_0001>

<bundles_post_ra>
// kernel: tpu_custom_call.1
= control target key start
LH: loop header
LB: loop body
LE: loop exit
PB: predicated region body
PF: predicated region fallthrough
CT: control target
= control target key end

     0   :  { %s3114_s0 = inlined_call_operand.hbm [shape: s32[16], index: 0, kind: input, shape index: {}]   ;;  %s3115_s1 = inlined_call_operand.hbm [shape: f32[64,1,128], index: 1, kind: input, shape index: {}]   ;;  %s3116_s2 = inlined_call_operand.hbm [shape: f32[64,1,128], index: 2, kind: input, shape index: {}]   ;;  %s3117_s3 = inlined_call_operand.hbm [shape: f32[64,1,128], index: 3, kind: input, shape index: {}]   ;;  %s3118_s4 = inlined_call_operand.hbm [shape: f32[64,1,128], index: 4, kind: input, shape index: {}]   ;;  %s3119_s5 = inlined_call_operand.hbm [shape: f32[64,1,128], index: 5, kind: input, shape index: {}]   ;;  %s3120_s6 = inlined_call_operand.hbm [shape: f32[64,1,128], index: 6, kind: input, shape index: {}]   ;;  %s3121_s7 = inlined_call_operand.hbm [shape: f32[64,1,128], index: 7, kind: input, shape index: {}]   ;;  %s3122_s8 = inlined_call_operand.hbm [shape: f32[64,1,128], index: 8, kind: input, shape index: {}]   ;;  %s3123_s9 = inlined_call_operand.vmem [shape: f32[8,128], index: 9, kind: input, shape index: {}]   ;;  %s3124_s10 = inlined_call_operand.hbm [shape: f32[2,8,128], index: 10, kind: output, shape index: {}]  }
   0x1   :  { %3194 = sst [smem:[#allocation81_spill]] %s3115_s1  ;;  %s1442_s15 = scalar_lea.hbm %s3114_s0, 16 }
   0x2   :  { %3195 = sst [smem:[#allocation82_spill]] %s3116_s2  ;;  %p1443_p0 = scmp.ne.s32.totalorder %s3114_s0, %s1442_s15 }
   0x3   :  { %3196 = sst [smem:[#allocation83_spill]] %s3117_s3  ;;  %p1446_p1 = scmp.lt.u32.totalorder %s1442_s15, %s3114_s0 }
   0x4   :  { %3197 = sst [smem:[#allocation84_spill]] %s3118_s4 }
   0x5   :  { %3198 = sst [smem:[#allocation85_spill]] %s3119_s5  ;;  %p1448_p2 = pnand %p1446_p1, %p1443_p0 }
   0x6   :  { %3199 = sst [smem:[#allocation86_spill]] %s3120_s6 }
   0x7   :  { %3200 = sst [smem:[#allocation87_spill]] %s3121_s7 }
   0x8   :  { %3201 = sst [smem:[#allocation88_spill]] %s3122_s8 }
   0x9   :  { %3202 = sst [smem:[#allocation89_spill]] %s3123_s9 }
   0xa   :  { %3203 = sst [smem:[#allocation90_spill]] %s3124_s10 }
   0xb   :  { %1451 = shalt.err (!%p1448_p2)  }
   0xc   :  { %s1998_s20 = smov [#allocation3]  }
   0xd   :  { %16 = dma.hbm_to_smem %s3114_s0, 16, %s1998_s20, [#allocation2] }
   0xe   :  { %1840 = dma.done.wait [#allocation2], 16 }
   0xf   :  { %1841 = vsyncadd [#allocation2], 4294967280 }
  0x10   :  { %18 = sfence }
  0x11   :  { %19 = vsyncpa [#allocation5], 0 }
  0x12   :  { %21 = vsyncpa [#allocation5 + $0x1], 0 }
  0x13   :  { %22 = vsyncpa [#allocation8], 0 }
  0x14   :  { %24 = vsyncpa [#allocation8 + $0x1], 0 }
  0x15   :  { %25 = vsyncpa [#allocation11], 0 }
  0x16   :  { %27 = vsyncpa [#allocation11 + $0x1], 0 }
  0x17   :  { %28 = vsyncpa [#allocation14], 0 }
  0x18   :  { %30 = vsyncpa [#allocation14 + $0x1], 0 }
  0x19   :  { %31 = vsyncpa [#allocation17], 0 }
  0x1a   :  { %33 = vsyncpa [#allocation17 + $0x1], 0 }
  0x1b   :  { %34 = vsyncpa [#allocation6], 0 }
  0x1c   :  { %36 = vsyncpa [#allocation6 + $0x1], 0  ;;  %s2075_s23 = smov 0   ;;  %s2077_s24 = smov 0  }
  0x1d   :  { %s2079_s0 = smov 0   ;;  %s2081_s25 = smov 0  }
  0x1e   :  { %s2083_s26 = smov 0   ;;  %s2085_s27 = smov 0  }
  0x1f   :  { %s2087_s28 = smov 0   ;;  %s2089_s29 = smov 0  }
  0x20   :  { %3204 = sst [smem:[#allocation45_spill]] %s2089_s29  ;;  %s2091_s30 = smov 0  }
  0x21   :  { %s2093_s11 = smov 0   ;;  %s2095_s12 = smov 0  }
  0x22   :  { %s2097_s13 = smov 0   ;;  %s2099_s14 = smov 0  }
  0x23   :  { %s2101_s15 = smov 0   ;;  %s2103_s16 = smov 0  }
  0x24   :  { %s2105_s17 = smov 0   ;;  %s2107_s18 = smov 0  }
  0x25   :  { %s2109_s19 = smov 0   ;;  %s2111_s20 = smov 0  }
  0x26   :  { %s2113_s21 = smov 0   ;;  %s2115_s22 = smov 0  }
  0x27   :  { %s2117_s10 = smov 0   ;;  %s2119_s9 = smov 0  }
  0x28   :  { %3205 = sst [smem:[#allocation46_spill]] %s2117_s10  ;;  %s2121_s8 = smov 0  }
  0x29   :  { %s2123_s7 = smov 0   ;;  %s2125_s5 = smov 0  }
  0x2a   :  { %s2127_s3 = smov 0   ;;  %s2129_s1 = smov 0  }
  0x2b   :  { %s2131_s6 = smov 0   ;;  %s2133_s4 = smov 0  }
  0x2c   :  { %3206 = sst [smem:[#allocation47_spill]] %s2131_s6 }
  0x2d   :  { %3207 = sst [smem:[#allocation48_spill]] %s2133_s4 }
  0x2e LB: > { %s3212_s29 = sld [smem:[#allocation45_spill]]  ;;  %3214 = sst [smem:[#allocation49_spill]] %s1884_s24  ;;  %s1988_s1 = sphi %s2129_s1, %s3425_s1   ;;  %s1984_s3 = sphi %s2127_s3, %s3424_s3   ;;  %s1980_s5 = sphi %s2125_s5, %s3423_s5   ;;  %s1976_s7 = sphi %s2123_s7, %s3422_s7   ;;  %s1972_s8 = sphi %s2121_s8, %s3409_s8   ;;  %s1968_s9 = sphi %s2119_s9, %s3421_s9   ;;  %s1960_s22 = sphi %s2115_s22, %s3419_s22   ;;  %s1956_s21 = sphi %s2113_s21, %s3404_s21   ;;  %s1952_s20 = sphi %s2111_s20, %s3418_s20   ;;  %s1948_s19 = sphi %s2109_s19, %s3402_s19   ;;  %s1944_s18 = sphi %s2107_s18, %s3417_s18   ;;  %s1940_s17 = sphi %s2105_s17, %s3416_s17   ;;  %s1936_s16 = sphi %s2103_s16, %s3398_s16   ;;  %s1932_s15 = sphi %s2101_s15, %s3397_s15   ;;  %s1928_s14 = sphi %s2099_s14, %s3396_s14   ;;  %s1924_s13 = sphi %s2097_s13, %s3395_s13   ;;  %s1920_s12 = sphi %s2095_s12, %s3394_s12   ;;  %s1916_s11 = sphi %s2093_s11, %s3393_s11   ;;  %s1912_s30 = sphi %s2091_s30, %s3392_s30   ;;  %s1904_s28 = sphi %s2087_s28, %s3390_s28   ;;  %s1900_s27 = sphi %s2085_s27, %s3406_s27   ;;  %s1896_s26 = sphi %s2083_s26, %s3389_s26   ;;  %s1892_s25 = sphi %s2081_s25, %s3388_s25   ;;  %s1888_s0 = sphi %s2079_s0, %s3387_s0   ;;  %s1884_s24 = sphi %s2077_s24, %s3386_s24   ;;  %s1880_s23 = sphi %s2075_s23, %s3385_s23  }
  0x2f   : > { %3213 = sst [smem:[#allocation45_spill]] %s1880_s23  ;;  %s3219_s10 = sld [smem:[#allocation46_spill]] }
  0x30   : > { %3215 = sst [smem:[#allocation50_spill]] %s1888_s0  ;;  %s3226_s6 = sld [smem:[#allocation47_spill]] }
  0x31   : > { %3216 = sst [smem:[#allocation51_spill]] %s1892_s25  ;;  %p112_p6 = scmp.ne.s32.totalorder %s1972_s8, %s1968_s9 }
  0x32   : > { %3217 = sst [smem:[#allocation52_spill]] %s1896_s26  ;;  %s3228_s4 = sld [smem:[#allocation48_spill]] }
  0x33   : > { %3218 = sst [smem:[#allocation53_spill]] %s1900_s27  ;;  %p385_p11 = scmp.ne.s32.totalorder %s1888_s0, %s1884_s24 }
  0x34   : > { %3220 = sst [smem:[#allocation46_spill]] %s1904_s28  ;;  %p391_p0 = scmp.ne.s32.totalorder %s1884_s24, %s1880_s23 }
  0x35   : > { %3221 = sst [smem:[#allocation54_spill]] %s3212_s29  ;;  %s105_s29 = sadd.s32 1, %s1972_s8 }
  0x36   : > { %3222 = sst [smem:[#allocation55_spill]] %s1912_s30  ;;  %s54_s26 = sadd.s32 1, %s3226_s6 }
  0x37   : > { %3223 = sst [smem:[#allocation56_spill]] %s1920_s12  ;;  %s2229_s28 = sshll.u32 %s3226_s6, 3 }
  0x38   : > { %3224 = sst [smem:[#allocation57_spill]] %s1924_s13  ;;  %s2224_s25 = sadd.s32 4294967295, %s3228_s4  }
  0x39   : > { %3225 = sst [smem:[#allocation58_spill]] %s1928_s14  ;;  %s1071_s27 = sadd.s32 4294967294, %s3228_s4  }
  0x3a   : > { %3227 = sst [smem:[#allocation47_spill]] %s1932_s15  ;;  %p56_p3 = scmp.ge.s32.totalorder %s54_s26, 2 }
  0x3b   : > { %3229 = sst [smem:[#allocation48_spill]] %s1936_s16  ;;  %p3154_p4 = scmp.eq.s32.totalorder %s3228_s4, 0 }
  0x3c   : > { %3230 = sst [smem:[#allocation59_spill]] %s1948_s19  ;;  %p3153_p5 = scmp.eq.s32.totalorder %s2224_s25, 0 }
  0x3d   : > { %3231 = sst [smem:[#allocation60_spill]] %s1952_s20  ;;  %s3430_s26 = smov (%p56_p3, %s54_s26), 0 }
  0x3e   : > { %3232 = sst [smem:[#allocation61_spill]] %s1956_s21  ;;  %s3241_s16 = smov %s3430_s26 }
  0x3f   : > { %3233 = sst [smem:[#allocation62_spill]] %s1960_s22  ;;  %s2238_s14 = sshll.u32 %s3241_s16, 3 }
  0x40   : > { %3234 = sst [smem:[#allocation63_spill]] %s1972_s8  ;;  %s100_s15 = sadd.s32 1, %s2238_s14 }
  0x41   : > { %3235 = sst [smem:[#allocation64_spill]] %s1976_s7  ;;  %p118_p7 = scmp.ne.s32.totalorder %s1968_s9, %s3219_s10 }
  0x42   : > { %3236 = sst [smem:[#allocation65_spill]] %s1984_s3  ;;  %p2246_p8 = por %p112_p6, %p3154_p4 }
  0x43   : > { %3237 = sst [smem:[#allocation66_spill]] %s1988_s1  ;;  %s95_s1 = sadd.s32 1, %s2229_s28 }
  0x44   : > { %3238 = sst [smem:[#allocation67_spill]] %s3226_s6  ;;  %p2252_p9 = por %p118_p7, %p3153_p5 }
  0x45   : > { %3239 = sst [smem:[#allocation68_spill]] %s3228_s4  ;;  %s370_s21 = ssub.s32 %s3226_s6, %s3241_s16 }
  0x46   : > { %3240 = sst [smem:[#allocation69_spill]] %s3430_s26  ;;  %p373_p10 = scmp.eq.s32.totalorder %s370_s21, 0 }
  0x47   : > { %s96_s30 = sld [smem:[#allocation3 + %s95_s1]]  ;;  %s375_s7 = sadd.s32 1, %s1888_s0 }
  0x48   : > { %s101_s20 = sld [smem:[#allocation3 + %s100_s15]]  ;;  %p386_p12 = scmp.eq.s32.totalorder %s2224_s25, 1 }
  0x49   : > { %s3243_s26 = scalar_select %p2252_p9, 1, 0 }
  0x4a   : > { %s2263_s10 = scalar_select %p373_p10, %s1888_s0, %s375_s7  }
  0x4b   : > { %3244 = sst [smem:[#allocation70_spill]] %s3243_s26  ;;  %p2265_p13 = por %p386_p12, %p385_p11 }
  0x4c   : > { %3245 = sst [smem:[#allocation71_spill]] %s2263_s10  ;;  %p392_p1 = scmp.eq.s32.totalorder %s1071_s27, 1 }
  0x4d   : > { %s3246_s15 = scalar_select %p2265_p13, 1, 0 }
  0x4e   : > { %s102_s26 = ssub.s32 %s96_s30, %s101_s20  ;;  %p2272_p6 = por %p392_p1, %p391_p0 }
  0x4f   : > { %3247 = sst [smem:[#allocation72_spill]] %s3246_s15  ;;  %p103_p2 = scmp.eq.s32.totalorder %s102_s26, 0 }
  0x50   : > { %s3248_s21 = scalar_select %p2272_p6, 1, 0 }
  0x51   : > { %p3152_p7 = scmp.lt.s32.totalorder %s3228_s4, 2  ;;  %s2281_s16 = sand.u32 1, %s3228_s4  }
  0x52   : > { %3249 = sst [smem:[#allocation73_spill]] %s3248_s21  ;;  %s442_s6 = sand.u32 1, %s1972_s8  }
  0x53   : > { %s2278_s7 = scalar_select %p103_p2, %s1972_s8, %s105_s29  }
  0x54   : > { %s1123_s10 = scalar_select %p2246_p8, [#allocation3], [#allocation20] }
  0x55   : > { %3250 = sst [smem:[#allocation74_spill]] %s2278_s7  ;;  %s3432_s1 = smov (!%p2246_p8, %s95_s1), 0 }
  0x56   : > { %s3434_s10 = smov (!%p3152_p7, %s1123_s10), [#allocation28]  ;;  %s3436_s1 = smov (!%p3152_p7, %s3432_s1), 0 }
  0x57   : > { %s443_s27 = scalar_lea.vmem [#allocation7], %s442_s6  ;;  %p2296_p10 = pnand %p3152_p7, %p2246_p8 }
  0x58   : > { %s455_s30 = sshll.u32 %s443_s27, 4  ;;  %s448_s20 = sld [smem:[%s3434_s10 + %s3436_s1]]  ;;  %s2300_s30 = int_to_ptr.vmem [resolvable:$true] %s455_s30 }
  0x59   : > { %p1107_p11 = scmp.ge.s32.totalorder %s3228_s4, 1  ;;  %p592_p12 = scmp.lt.s32.totalorder %s3228_s4, 3 }
  0x5a   : > { %s3155_s6 = sadd.s32 3, %s2229_s28  ;;  %s3253_s2 = sld [smem:[#allocation82_spill]] }
  0x5b   : > { %p2304_p0 = pnand %p1107_p11, %p592_p12  ;;  %s2316_s1 = sld [smem:[#allocation3 + %s3155_s6]] }
  0x5c   : > { %s3158_s10 = scalar_lea.sflag [#allocation8], %s2281_s16  ;;  %p1454_p1 = pneg %p2296_p10 }
  0x5e   : > { %s1094_s7 = sshll.u32 %s448_s20, 4 }
  0x60   : > { %s2312_s8 = scalar_lea.hbm %s3253_s2, %s1094_s7  ;;  %s1457_s7 = scalar_lea.hbm %s3253_s2, 1024 }
  0x61   : > { %s1452_s0 = scalar_lea.hbm %s2312_s8, 16  ;;  %p1458_p12 = scmp.lt.u32.totalorder %s2312_s8, %s3253_s2 }
  0x62   : > { %p1453_p8 = scmp.ne.s32.totalorder %s2312_s8, %s1452_s0  ;;  %p1459_p3 = scmp.lt.u32.totalorder %s1457_s7, %s1452_s0 }
  0x63   : > { %p1461_p5 = scmp.lt.u32.totalorder %s1452_s0, %s2312_s8 }
  0x64   : > { %p1455_p2 = pnand %p1454_p1, %p1453_p8  ;;  %p1460_p7 = por %p1459_p3, %p1458_p12 }
  0x66   : > { %p1456_p11 = pneg %p1455_p2  ;;  %p1462_p4 = por %p1461_p5, %p1460_p7 }
  0x68   : > { %p1463_p6 = pnand %p1462_p4, %p1456_p11 }
  0x6a   : > { %1466 = shalt.err (!%p1463_p6)
}
  0x6b   : > { %s1467_s6 = scalar_lea.vmem %s2300_s30, 16  ;;  %s1999_s20 = smov [#allocation7]  }
  0x6c   : > { %p1468_p8 = scmp.ne.s32.totalorder %s2300_s30, %s1467_s6  ;;  %s1472_s27 = sshll.u32 %s1999_s20, 4  ;;  %s1473_s27 = int_to_ptr.vmem [resolvable:$false] %s1472_s27 }
  0x6d   : > { %s1474_s21 = scalar_lea.vmem %s1473_s27, 32  ;;  %p1475_p9 = scmp.lt.s32.totalorder %s2300_s30, %s1473_s27 }
  0x6e   : > { %p1470_p2 = pnand %p1468_p8, %p1454_p1  ;;  %p1476_p3 = scmp.lt.s32.totalorder %s1474_s21, %s1467_s6 }
  0x70   : > { %p1471_p13 = pneg %p1470_p2  ;;  %p1477_p12 = por %p1476_p3, %p1475_p9 }
  0x72   : > { %p1478_p5 = pnand %p1477_p12, %p1471_p13 }
  0x74   : > { %1481 = shalt.err (!%p1478_p5)
}
  0x75   : > { %1164 = dma.hbm_to_vmem [thread:$0]  (!%p2296_p10), %s2312_s8, 16, %s2300_s30, %s3158_s10  }
  0x76   : > { %s172_s0 = sadd.s32 3, %s2238_s14  ;;  %p184_p4 = scmp.ne.s32.totalorder %s1948_s19, %s1944_s18 }
  0x77   : > { %s173_s29 = sld [smem:[#allocation3 + %s172_s0]]  ;;  %s177_s6 = sadd.s32 1, %s1948_s19 }
  0x78   : > { %p190_p9 = scmp.ne.s32.totalorder %s1944_s18, %s1940_s17  ;;  %p3254_p13 = scmp.eq.s32.totalorder %s3228_s4, 0 }
  0x79   : > { %s486_s7 = sand.u32 1, %s1948_s19   ;;  %p3255_p7 = scmp.eq.s32.totalorder %s2224_s25, 0 }
  0x7a   : > { %p186_p6 = por %p184_p4, %p3254_p13  ;;  %s3257_s30 = sadd.s32 3, %s2229_s28 }
  0x7b   : > { %p2357_p1 = por %p190_p9, %p3255_p7  ;;  %s487_s17 = scalar_lea.vmem [#allocation10], %s486_s7 }
  0x7c   : > { %s1129_s8 = scalar_select %p186_p6, [#allocation3], [#allocation22] }
  0x7d   : > { %s3256_s22 = scalar_select %p2357_p1, 1, 0 }
  0x7e   : > { %s3438_s30 = smov (!%p186_p6, %s3257_s30), 0  ;;  %s174_s20 = ssub.s32 %s2316_s1, %s173_s29 }
  0x7f   : > { %p175_p10 = scmp.eq.s32.totalorder %s174_s20, 0  ;;  %s499_s27 = sshll.u32 %s487_s17, 4  ;;  %s2383_s27 = int_to_ptr.vmem [resolvable:$true] %s499_s27 }
  0x80   : > { %p3258_p11 = scmp.lt.s32.totalorder %s3228_s4, 2  ;;  %s239_s29 = sadd.s32 5, %s2229_s28 }
  0x81   : > { %s2367_s21 = scalar_select %p175_p10, %s1948_s19, %s177_s6  }
  0x82   : > { %s3440_s8 = smov (!%p3258_p11, %s1129_s8), [#allocation30]  ;;  %p3260_p8 = pmov %p3258_p11 }
  0x83   : > { %3259 = sst [smem:[#allocation75_spill]] %s2367_s21  ;;  %s244_s7 = sadd.s32 5, %s2238_s14 }
  0x84   : > { %s3442_s30 = smov (!%p3260_p8, %s3438_s30), 0  ;;  %p3261_p2 = pmov %p3260_p8 }
  0x85   : > { %s492_s1 = sld [smem:[%s3440_s8 + %s3442_s30]]  ;;  %s3164_s8 = scalar_lea.sflag [#allocation11], %s2281_s16 }
  0x86   : > { %p2373_p3 = pnand %p3261_p2, %p186_p6  ;;  %s2380_s20 = sld [smem:[#allocation3 + %s239_s29]] }
  0x87   : > { %s2385_s17 = sld [smem:[#allocation3 + %s244_s7]] }
  0x88   : > { %s3263_s21 = sld [smem:[#allocation84_spill]]  ;;  %p1484_p9 = pneg %p2373_p3 }
  0x8b   : > { %s1098_s6 = sshll.u32 %s492_s1, 4 }
  0x8e   : > { %s3264_s4 = smov %s3263_s21  ;;  %s2392_s19 = scalar_lea.hbm %s3263_s21, %s1098_s6 }
  0x8f   : > { %s1482_s30 = scalar_lea.hbm %s2392_s19, 16  ;;  %s1487_s2 = scalar_lea.hbm %s3264_s4, 1024 }
  0x90   : > { %p1483_p4 = scmp.ne.s32.totalorder %s2392_s19, %s1482_s30  ;;  %p1488_p7 = scmp.lt.u32.totalorder %s2392_s19, %s3264_s4 }
  0x91   : > { %p1489_p10 = scmp.lt.u32.totalorder %s1487_s2, %s1482_s30  ;;  %p1491_p8 = scmp.lt.u32.totalorder %s1482_s30, %s2392_s19 }
  0x92   : > { %p1485_p13 = pnand %p1484_p9, %p1483_p4 }
  0x93   : > { %p1490_p11 = por %p1489_p10, %p1488_p7 }
  0x94   : > { %p1486_p6 = pneg %p1485_p13 }
  0x95   : > { %p1492_p2 = por %p1491_p8, %p1490_p11 }
  0x97   : > { %p1493_p5 = pnand %p1492_p2, %p1486_p6 }
  0x99   : > { %1496 = shalt.err (!%p1493_p5)
}
  0x9a   : > { %s1497_s6 = scalar_lea.vmem %s2383_s27, 16  ;;  %s2000_s1 = smov [#allocation10]  }
  0x9b   : > { %p1498_p4 = scmp.ne.s32.totalorder %s2383_s27, %s1497_s6  ;;  %s1502_s7 = sshll.u32 %s2000_s1, 4  ;;  %s1503_s7 = int_to_ptr.vmem [resolvable:$false] %s1502_s7 }
  0x9c   : > { %s1504_s10 = scalar_lea.vmem %s1503_s7, 32  ;;  %p1505_p1 = scmp.lt.s32.totalorder %s2383_s27, %s1503_s7 }
  0x9d   : > { %p1500_p13 = pnand %p1498_p4, %p1484_p9  ;;  %p1506_p7 = scmp.lt.s32.totalorder %s1504_s10, %s1497_s6 }
  0x9f   : > { %p1501_p12 = pneg %p1500_p13  ;;  %p1507_p10 = por %p1506_p7, %p1505_p1 }
  0xa1   : > { %p1508_p11 = pnand %p1507_p10, %p1501_p12 }
  0xa3   : > { %1511 = shalt.err (!%p1508_p11)
}
  0xa4   : > { %s3265_s30 = sld [smem:[#allocation68_spill]]  ;;  %p3267_p12 = scmp.ne.s32.totalorder %s1924_s13, %s1920_s12 }
  0xa5   : > { %1174 = dma.hbm_to_vmem [thread:$0]  (!%p2373_p3), %s2392_s19, 16, %s2383_s27, %s3164_s8  }
  0xa6   : > { %p3269_p9 = scmp.eq.s32.totalorder %s2224_s25, 0  ;;  %p3270_p6 = scmp.ne.s32.totalorder %s1920_s12, %s1916_s11 }
  0xa7   : > { %s249_s21 = sadd.s32 1, %s1924_s13  ;;  %s530_s6 = sand.u32 1, %s1924_s13  }
  0xa8   : > { %p2438_p8 = por %p3270_p6, %p3269_p9  ;;  %s246_s19 = ssub.s32 %s2380_s20, %s2385_s17 }
  0xa9   : > { %p247_p3 = scmp.eq.s32.totalorder %s246_s19, 0  ;;  %s531_s27 = scalar_lea.vmem [#allocation13], %s530_s6 }
  0xaa   : > { %p3266_p1 = scmp.eq.s32.totalorder %s3265_s30, 0  ;;  %s543_s1 = sshll.u32 %s531_s27, 4  ;;  %s2467_s1 = int_to_ptr.vmem [resolvable:$true] %s543_s1 }
  0xab   : > { %s3271_s2 = scalar_select %p2438_p8, 1, 0 }
  0xac   : > { %p2429_p5 = por %p3267_p12, %p3266_p1  ;;  %p3274_p2 = scmp.lt.s32.totalorder %s3265_s30, 2 }
  0xad   : > { %3272 = sst [smem:[#allocation76_spill]] %s3271_s2  ;;  %s3168_s0 = scalar_lea.sflag [#allocation14], %s2281_s16 }
  0xae   : > { %s1135_s11 = scalar_select %p2429_p5, [#allocation3], [#allocation24] }
  0xaf   : > { %s2449_s7 = scalar_select %p247_p3, %s1924_s13, %s249_s21  }
  0xb0   : > { %s3444_s29 = smov (!%p2429_p5, %s239_s29), 0  ;;  %s3446_s11 = smov (!%p3274_p2, %s1135_s11), [#allocation32] }
  0xb1   : > { %3273 = sst [smem:[#allocation77_spill]] %s2449_s7  ;;  %p3275_p4 = pmov %p3274_p2 }
  0xb2   : > { %p3276_p13 = pmov %p3274_p2  ;;  %s2470_s10 = sld [smem:[#allocation3 + %s2229_s28]] }
  0xb3   : > { %s3448_s29 = smov (!%p3275_p4, %s3444_s29), 0  ;;  %s2473_s21 = sld [smem:[#allocation3 + %s2238_s14]] }
  0xb4   : > { %p2463_p7 = pnand %p3276_p13, %p2429_p5  ;;  %s536_s17 = sld [smem:[%s3446_s11 + %s3448_s29]] }
  0xb5   : > { %s3278_s8 = sld [smem:[#allocation86_spill]] }
  0xb6   : > { %p1514_p1 = pneg %p2463_p7 }
  0xba   : > { %s1102_s6 = sshll.u32 %s536_s17, 4 }
  0xbb   : > { %s3279_s4 = smov %s3278_s8  ;;  %s2478_s7 = scalar_lea.hbm %s3278_s8, %s1102_s6 }
  0xbc   : > { %s1512_s13 = scalar_lea.hbm %s2478_s7, 16  ;;  %s1517_s17 = scalar_lea.hbm %s3279_s4, 1024 }
  0xbd   : > { %p1513_p11 = scmp.ne.s32.totalorder %s2478_s7, %s1512_s13  ;;  %p1518_p9 = scmp.lt.u32.totalorder %s2478_s7, %s3279_s4 }
  0xbe   : > { %p1519_p6 = scmp.lt.u32.totalorder %s1517_s17, %s1512_s13  ;;  %p1521_p2 = scmp.lt.u32.totalorder %s1512_s13, %s2478_s7 }
  0xbf   : > { %p1515_p12 = pnand %p1514_p1, %p1513_p11 }
  0xc0   : > { %p1520_p3 = por %p1519_p6, %p1518_p9 }
  0xc1   : > { %p1516_p5 = pneg %p1515_p12 }
  0xc2   : > { %p1522_p4 = por %p1521_p2, %p1520_p3 }
  0xc4   : > { %p1523_p13 = pnand %p1522_p4, %p1516_p5 }
  0xc6   : > { %1526 = shalt.err (!%p1523_p13)
}
  0xc7   : > { %s1527_s19 = scalar_lea.vmem %s2467_s1, 16  ;;  %s2001_s27 = smov [#allocation13]  }
  0xc8   : > { %p1528_p11 = scmp.ne.s32.totalorder %s2467_s1, %s1527_s19  ;;  %s1532_s29 = sshll.u32 %s2001_s27, 4  ;;  %s1533_s29 = int_to_ptr.vmem [resolvable:$false] %s1532_s29 }
  0xc9   : > { %s1534_s11 = scalar_lea.vmem %s1533_s29, 32  ;;  %p1535_p8 = scmp.lt.s32.totalorder %s2467_s1, %s1533_s29 }
  0xca   : > { %p1530_p12 = pnand %p1528_p11, %p1514_p1  ;;  %p1536_p9 = scmp.lt.s32.totalorder %s1534_s11, %s1527_s19 }
  0xcc   : > { %p1531_p10 = pneg %p1530_p12  ;;  %p1537_p6 = por %p1536_p9, %p1535_p8 }
  0xce   : > { %p1538_p3 = pnand %p1537_p6, %p1531_p10 }
  0xd0   : > { %1541 = shalt.err (!%p1538_p3)
}
  0xd1   : > { %s3280_s13 = sld [smem:[#allocation64_spill]]  ;;  %s69_s20 = sadd.s32 1, %s1984_s3 }
  0xd2   : > { %1184 = dma.hbm_to_vmem [thread:$0]  (!%p2463_p7), %s2478_s7, 16, %s2467_s1, %s3168_s0  }
  0xd3   : > { %p3281_p10 = scmp.ne.s32.totalorder %s1984_s3, %s1980_s5  ;;  %p3282_p1 = scmp.eq.s32.totalorder %s3265_s30, 0 }
  0xd4   : > { %s419_s17 = sand.u32 1, %s1984_s3   ;;  %s66_s8 = ssub.s32 %s2470_s10, %s2473_s21 }
  0xd5   : > { %p78_p5 = por %p3282_p1, %p3281_p10  ;;  %p3283_p2 = scmp.eq.s32.totalorder %s2224_s25, 0 }
  0xd6   : > { %p67_p13 = scmp.eq.s32.totalorder %s66_s8, 0  ;;  %p3286_p11 = scmp.lt.s32.totalorder %s3265_s30, 2 }
  0xd7   : > { %p82_p8 = scmp.ne.s32.totalorder %s1980_s5, %s3280_s13  ;;  %s3287_s19 = sld [smem:[#allocation61_spill]] }
  0xd8   : > { %s3288_s27 = sld [smem:[#allocation62_spill]]  ;;  %p2529_p7 = pnand %p3286_p11, %p78_p5 }
  0xd9   : > { %p2523_p4 = por %p3283_p2, %p82_p8  ;;  %s3291_s29 = sld [smem:[#allocation60_spill]] }
  0xda   : > { %s2534_s7 = scalar_select %p67_p13, %s1984_s3, %s69_s20  }
  0xdb   : > { %s3284_s6 = scalar_select %p2523_p4, 1, 0 }
  0xdc   : > { %3290 = sst [smem:[#allocation78_spill]] %s2534_s7  ;;  %p3292_p12 = pmov %p3286_p11 }
  0xdd   : > { %3285 = sst [smem:[#allocation64_spill]] %s3284_s6  ;;  %p3293_p9 = pmov %p3286_p11 }
  0xde   : > { %s1120_s11 = scalar_select %p78_p5, [#allocation3], [#allocation19] }
  0xdf   : > { %s1121_s13 = scalar_select %p78_p5, %s2229_s28, 0 }
  0xe0   : > { %s3450_s11 = smov (!%p3292_p12, %s1120_s11), [#allocation27]  ;;  %s422_s21 = scalar_lea.vmem [#allocation4], %s419_s17 }
  0xe1   : > { %s3452_s13 = smov (!%p3293_p9, %s1121_s13), 0  ;;  %s433_s8 = sshll.u32 %s422_s21, 4  ;;  %s2547_s8 = int_to_ptr.vmem [resolvable:$true] %s433_s8 }
  0xe2   : > { %s426_s10 = sld [smem:[%s3450_s11 + %s3452_s13]]  ;;  %s131_s0 = sadd.s32 2, %s2229_s28 }
  0xe3   : > { %s2544_s4 = sld [smem:[#allocation3 + %s131_s0]]  ;;  %s136_s23 = sadd.s32 2, %s2238_s14 }
  0xe4   : > { %s2549_s20 = sld [smem:[#allocation3 + %s136_s23]]  ;;  %s420_s11 = scalar_lea.sflag [#allocation5], %s419_s17 }
  0xe5   : > { %s3294_s24 = sld [smem:[#allocation81_spill]]  ;;  %p1544_p10 = pneg %p2529_p7 }
  0xe8   : > { %s1092_s7 = sshll.u32 %s426_s10, 4 }
  0xeb   : > { %s3295_s2 = smov %s3294_s24  ;;  %s2556_s12 = scalar_lea.hbm %s3294_s24, %s1092_s7 }
  0xec   : > { %s1542_s13 = scalar_lea.hbm %s2556_s12, 16  ;;  %s1547_s3 = scalar_lea.hbm %s3295_s2, 1024 }
  0xed   : > { %p1543_p8 = scmp.ne.s32.totalorder %s2556_s12, %s1542_s13  ;;  %p1548_p2 = scmp.lt.u32.totalorder %s2556_s12, %s3295_s2 }
  0xee   : > { %p1549_p13 = scmp.lt.u32.totalorder %s1547_s3, %s1542_s13  ;;  %p1551_p12 = scmp.lt.u32.totalorder %s1542_s13, %s2556_s12 }
  0xef   : > { %p1545_p1 = pnand %p1544_p10, %p1543_p8 }
  0xf0   : > { %p1550_p11 = por %p1549_p13, %p1548_p2 }
  0xf1   : > { %p1546_p5 = pneg %p1545_p1 }
  0xf2   : > { %p1552_p9 = por %p1551_p12, %p1550_p11 }
  0xf4   : > { %p1553_p3 = pnand %p1552_p9, %p1546_p5 }
  0xf6   : > { %1556 = shalt.err (!%p1553_p3)
}
  0xf7   : > { %s1557_s17 = scalar_lea.vmem %s2547_s8, 16  ;;  %s2002_s7 = smov [#allocation4]  }
  0xf8   : > { %p1558_p8 = scmp.ne.s32.totalorder %s2547_s8, %s1557_s17  ;;  %s1562_s21 = sshll.u32 %s2002_s7, 4  ;;  %s1563_s21 = int_to_ptr.vmem [resolvable:$false] %s1562_s21 }
  0xf9   : > { %s1564_s23 = scalar_lea.vmem %s1563_s21, 32  ;;  %p1565_p4 = scmp.lt.s32.totalorder %s2547_s8, %s1563_s21 }
  0xfa   : > { %p1560_p1 = pnand %p1558_p8, %p1544_p10  ;;  %p1566_p2 = scmp.lt.s32.totalorder %s1564_s23, %s1557_s17 }
  0xfc   : > { %p1561_p6 = pneg %p1560_p1  ;;  %p1567_p13 = por %p1566_p2, %p1565_p4 }
  0xfe   : > { %p1568_p11 = pnand %p1567_p13, %p1561_p6 }
 0x100   : > { %1571 = shalt.err (!%p1568_p11)
}
 0x101   : > { %1159 = dma.hbm_to_vmem [thread:$0]  (!%p2529_p7), %s2556_s12, 16, %s2547_s8, %s420_s11  }
 0x102   : > { %p3296_p4 = scmp.eq.s32.totalorder %s3265_s30, 0  ;;  %p3297_p6 = scmp.ne.s32.totalorder %s3288_s27, %s3287_s19 }
 0x103   : > { %p3299_p10 = scmp.eq.s32.totalorder %s2224_s25, 0  ;;  %p3300_p5 = scmp.ne.s32.totalorder %s3287_s19, %s3291_s29 }
 0x104   : > { %p2590_p3 = por %p3297_p6, %p3296_p4  ;;  %s141_s10 = sadd.s32 1, %s3288_s27 }
 0x105   : > { %p2599_p12 = por %p3300_p5, %p3299_p10  ;;  %s464_s12 = sand.u32 1, %s3288_s27  }
 0x106   : > { %s138_s8 = ssub.s32 %s2544_s4, %s2549_s20  ;;  %s3302_s11 = sld [smem:[#allocation47_spill]] }
 0x107   : > { %s3301_s13 = scalar_select %p2599_p12, 1, 0 }
 0x108   : > { %p139_p7 = scmp.eq.s32.totalorder %s138_s8, 0  ;;  %s3303_s3 = sld [smem:[#allocation48_spill]] }
 0x109   : > { %s1126_s24 = scalar_select %p2590_p3, [#allocation3], [#allocation21] }
 0x10a   : > { %s3454_s27 = smov (!%p139_p7, %s3288_s27), %s141_s10  ;;  %s3305_s19 = sld [smem:[#allocation58_spill]] }
 0x10b   : > { %3304 = sst [smem:[#allocation79_spill]] %s3454_s27  ;;  %s3456_s0 = smov (!%p2590_p3, %s131_s0), 0 }
 0x10c   : > { %p3306_p9 = scmp.lt.s32.totalorder %s3265_s30, 2  ;;  %s465_s29 = scalar_lea.vmem [#allocation9], %s464_s12 }
 0x10d   : > { %s477_s15 = sshll.u32 %s465_s29, 4  ;;  %s203_s17 = sadd.s32 4, %s2229_s28  ;;  %s2634_s15 = int_to_ptr.vmem [resolvable:$true] %s477_s15 }
 0x10e   : > { %s3458_s24 = smov (!%p3306_p9, %s1126_s24), [#allocation29]  ;;  %p3307_p8 = pmov %p3306_p9 }
 0x10f   : > { %s2631_s7 = sld [smem:[#allocation3 + %s203_s17]]  ;;  %s208_s21 = sadd.s32 4, %s2238_s14 }
 0x110   : > { %s3460_s0 = smov (!%p3307_p8, %s3456_s0), 0  ;;  %p3308_p1 = pmov %p3307_p8 }
 0x111   : > { %s470_s20 = sld [smem:[%s3458_s24 + %s3460_s0]] }
 0x112   : > { %p2624_p2 = pnand %p3308_p1, %p2590_p3  ;;  %s2636_s23 = sld [smem:[#allocation3 + %s208_s21]] }
 0x113   : > { %s3310_s8 = sld [smem:[#allocation83_spill]] }
 0x114   : > { %p1574_p6 = pneg %p2624_p2 }
 0x117   : > { %s1096_s10 = sshll.u32 %s470_s20, 4 }
 0x119   : > { %s3311_s2 = smov %s3310_s8  ;;  %s2643_s29 = scalar_lea.hbm %s3310_s8, %s1096_s10 }
 0x11a   : > { %s1572_s0 = scalar_lea.hbm %s2643_s29, 16  ;;  %s1577_s21 = scalar_lea.hbm %s3311_s2, 1024 }
 0x11b   : > { %p1573_p4 = scmp.ne.s32.totalorder %s2643_s29, %s1572_s0  ;;  %p1578_p5 = scmp.lt.u32.totalorder %s2643_s29, %s3311_s2 }
 0x11c   : > { %p1579_p7 = scmp.lt.u32.totalorder %s1577_s21, %s1572_s0  ;;  %p1581_p8 = scmp.lt.u32.totalorder %s1572_s0, %s2643_s29 }
 0x11d   : > { %p1575_p3 = pnand %p1574_p6, %p1573_p4 }
 0x11e   : > { %p1580_p9 = por %p1579_p7, %p1578_p5 }
 0x11f   : > { %p1576_p10 = pneg %p1575_p3 }
 0x120   : > { %p1582_p1 = por %p1581_p8, %p1580_p9 }
 0x122   : > { %p1583_p11 = pnand %p1582_p1, %p1576_p10 }
 0x124   : > { %1586 = shalt.err (!%p1583_p11)
}
 0x125   : > { %s1587_s12 = scalar_lea.vmem %s2634_s15, 16  ;;  %s2003_s8 = smov [#allocation9]  }
 0x126   : > { %p1588_p4 = scmp.ne.s32.totalorder %s2634_s15, %s1587_s12  ;;  %s1592_s24 = sshll.u32 %s2003_s8, 4  ;;  %s1593_s24 = int_to_ptr.vmem [resolvable:$false] %s1592_s24 }
 0x127   : > { %s1594_s20 = scalar_lea.vmem %s1593_s24, 32  ;;  %p1595_p12 = scmp.lt.s32.totalorder %s2634_s15, %s1593_s24 }
 0x128   : > { %p1590_p3 = pnand %p1588_p4, %p1574_p6  ;;  %p1596_p5 = scmp.lt.s32.totalorder %s1594_s20, %s1587_s12 }
 0x12a   : > { %p1591_p13 = pneg %p1590_p3  ;;  %p1597_p7 = por %p1596_p5, %p1595_p12 }
 0x12c   : > { %p1598_p9 = pnand %p1597_p7, %p1591_p13 }
 0x12e   : > { %1601 = shalt.err (!%p1598_p9)
}
 0x12f   : > { %s3312_s0 = scalar_lea.sflag [#allocation8], %s2281_s16  ;;  %p3313_p12 = scmp.eq.s32.totalorder %s3265_s30, 0 }
 0x130   : > { %1169 = dma.hbm_to_vmem [thread:$0]  (!%p2624_p2), %s2643_s29, 16, %s2634_s15, %s3312_s0  }
 0x131   : > { %p3314_p13 = scmp.ne.s32.totalorder %s3303_s3, %s3302_s11  ;;  %p3316_p6 = scmp.eq.s32.totalorder %s2224_s25, 0 }
 0x132   : > { %p3317_p10 = scmp.ne.s32.totalorder %s3302_s11, %s3305_s19  ;;  %s213_s1 = sadd.s32 1, %s3303_s3 }
 0x133   : > { %p2679_p11 = por %p3314_p13, %p3313_p12  ;;  %s508_s15 = sand.u32 1, %s3303_s3  }
 0x134   : > { %p2688_p8 = por %p3317_p10, %p3316_p6  ;;  %s210_s29 = ssub.s32 %s2631_s7, %s2636_s23 }
 0x135   : > { %p211_p2 = scmp.eq.s32.totalorder %s210_s29, 0  ;;  %s3319_s10 = sld [smem:[#allocation54_spill]] }
 0x136   : > { %s3318_s21 = scalar_select %p2688_p8, 1, 0 }
 0x137   : > { %s3320_s12 = sld [smem:[#allocation55_spill]]  ;;  %s3462_s3 = smov (!%p211_p2, %s3303_s3), %s213_s1 }
 0x138   : > { %s1132_s8 = scalar_select %p2679_p11, [#allocation3], [#allocation23] }
 0x139   : > { %3321 = sst [smem:[#allocation80_spill]] %s3462_s3  ;;  %s3322_s11 = sld [smem:[#allocation46_spill]] }
 0x13a   : > { %s3464_s17 = smov (!%p2679_p11, %s203_s17), 0  ;;  %p3323_p1 = scmp.lt.s32.totalorder %s3265_s30, 2 }
 0x13b   : > { %s509_s19 = scalar_lea.vmem [#allocation12], %s508_s15  ;;  %s275_s20 = sadd.s32 6, %s2229_s28 }
 0x13c   : > { %s3466_s8 = smov (!%p3323_p1, %s1132_s8), [#allocation31]  ;;  %p3324_p4 = pmov %p3323_p1 }
 0x13d   : > { %s521_s24 = sshll.u32 %s509_s19, 4  ;;  %p3325_p3 = pmov %p3323_p1  ;;  %s2723_s24 = int_to_ptr.vmem [resolvable:$true] %s521_s24 }
 0x13e   : > { %s3468_s17 = smov (!%p3324_p4, %s3464_s17), 0  ;;  %s2720_s0 = sld [smem:[#allocation3 + %s275_s20]] }
 0x13f   : > { %p2713_p5 = pnand %p3325_p3, %p2679_p11  ;;  %s514_s23 = sld [smem:[%s3466_s8 + %s3468_s17]] }
 0x140   : > { %s280_s1 = sadd.s32 6, %s2238_s14  ;;  %s3327_s2 = sld [smem:[#allocation85_spill]] }
 0x141   : > { %s2725_s29 = sld [smem:[#allocation3 + %s280_s1]]  ;;  %p1604_p13 = pneg %p2713_p5 }
 0x145   : > { %s1100_s15 = sshll.u32 %s514_s23, 4 }
 0x146   : > { %s2732_s27 = scalar_lea.hbm %s3327_s2, %s1100_s15  ;;  %s1607_s1 = scalar_lea.hbm %s3327_s2, 1024 }
 0x147   : > { %s1602_s17 = scalar_lea.hbm %s2732_s27, 16  ;;  %p1608_p10 = scmp.lt.u32.totalorder %s2732_s27, %s3327_s2 }
 0x148   : > { %p1603_p12 = scmp.ne.s32.totalorder %s2732_s27, %s1602_s17  ;;  %p1609_p2 = scmp.lt.u32.totalorder %s1607_s1, %s1602_s17 }
 0x149   : > { %p1611_p4 = scmp.lt.u32.totalorder %s1602_s17, %s2732_s27 }
 0x14a   : > { %p1605_p11 = pnand %p1604_p13, %p1603_p12  ;;  %p1610_p1 = por %p1609_p2, %p1608_p10 }
 0x14c   : > { %p1606_p6 = pneg %p1605_p11  ;;  %p1612_p3 = por %p1611_p4, %p1610_p1 }
 0x14e   : > { %p1613_p9 = pnand %p1612_p3, %p1606_p6 }
 0x150   : > { %1616 = shalt.err (!%p1613_p9)
}
 0x151   : > { %s1617_s19 = scalar_lea.vmem %s2723_s24, 16  ;;  %s2004_s8 = smov [#allocation12]  }
 0x152   : > { %p1618_p12 = scmp.ne.s32.totalorder %s2723_s24, %s1617_s19  ;;  %s1622_s23 = sshll.u32 %s2004_s8, 4  ;;  %s1623_s23 = int_to_ptr.vmem [resolvable:$false] %s1622_s23 }
 0x153   : > { %s1624_s4 = scalar_lea.vmem %s1623_s23, 32  ;;  %p1625_p8 = scmp.lt.s32.totalorder %s2723_s24, %s1623_s23 }
 0x154   : > { %p1620_p11 = pnand %p1618_p12, %p1604_p13  ;;  %p1626_p10 = scmp.lt.s32.totalorder %s1624_s4, %s1617_s19 }
 0x156   : > { %p1621_p7 = pneg %p1620_p11  ;;  %p1627_p2 = por %p1626_p10, %p1625_p8 }
 0x158   : > { %p1628_p1 = pnand %p1627_p2, %p1621_p7 }
 0x15a   : > { %1631 = shalt.err (!%p1628_p1)
}
 0x15b   : > { %s3328_s17 = scalar_lea.sflag [#allocation11], %s2281_s16  ;;  %p3329_p8 = scmp.eq.s32.totalorder %s3265_s30, 0 }
 0x15c   : > { %1179 = dma.hbm_to_vmem [thread:$0]  (!%p2713_p5), %s2732_s27, 16, %s2723_s24, %s3328_s17  }
 0x15d   : > { %p3330_p7 = scmp.ne.s32.totalorder %s3320_s12, %s3319_s10  ;;  %p3332_p13 = scmp.eq.s32.totalorder %s2224_s25, 0 }
 0x15e   : > { %p3333_p6 = scmp.ne.s32.totalorder %s3319_s10, %s3322_s11  ;;  %s285_s15 = sadd.s32 1, %s3320_s12 }
 0x15f   : > { %p2768_p9 = por %p3330_p7, %p3329_p8  ;;  %s552_s27 = sand.u32 1, %s3320_s12  }
 0x160   : > { %p2777_p4 = por %p3333_p6, %p3332_p13  ;;  %s282_s24 = ssub.s32 %s2720_s0, %s2725_s29 }
 0x161   : > { %p283_p5 = scmp.eq.s32.totalorder %s282_s24, 0  ;;  %s3335_s19 = sld [smem:[#allocation52_spill]] }
 0x162   : > { %s3334_s1 = scalar_select %p2777_p4, 1, 0 }
 0x163   : > { %s3336_s8 = sld [smem:[#allocation53_spill]]  ;;  %s3470_s12 = smov (!%p283_p5, %s3320_s12), %s285_s15 }
 0x164   : > { %s1138_s23 = scalar_select %p2768_p9, [#allocation3], [#allocation25] }
 0x165   : > { %3337 = sst [smem:[#allocation46_spill]] %s3470_s12  ;;  %s3338_s10 = sld [smem:[#allocation51_spill]] }
 0x166   : > { %s3472_s20 = smov (!%p2768_p9, %s275_s20), 0  ;;  %p3339_p3 = scmp.lt.s32.totalorder %s3265_s30, 2 }
 0x167   : > { %s553_s11 = scalar_lea.vmem [#allocation15], %s552_s27  ;;  %s311_s17 = sadd.s32 7, %s2229_s28 }
 0x168   : > { %s3474_s23 = smov (!%p3339_p3, %s1138_s23), [#allocation33]  ;;  %p3340_p12 = pmov %p3339_p3 }
 0x169   : > { %s565_s4 = sshll.u32 %s553_s11, 4  ;;  %p3341_p11 = pmov %p3339_p3  ;;  %s2812_s4 = int_to_ptr.vmem [resolvable:$true] %s565_s4 }
 0x16a   : > { %s3476_s20 = smov (!%p3340_p12, %s3472_s20), 0  ;;  %s2809_s15 = sld [smem:[#allocation3 + %s311_s17]] }
 0x16b   : > { %p2802_p10 = pnand %p3341_p11, %p2768_p9  ;;  %s558_s29 = sld [smem:[%s3474_s23 + %s3476_s20]] }
 0x16c   : > { %s316_s24 = sadd.s32 7, %s2238_s14  ;;  %s3343_s3 = sld [smem:[#allocation87_spill]] }
 0x16d   : > { %s2814_s2 = sld [smem:[#allocation3 + %s316_s24]]  ;;  %p1634_p7 = pneg %p2802_p10 }
 0x171   : > { %s1104_s27 = sshll.u32 %s558_s29, 4 }
 0x172   : > { %s3344_s6 = smov %s3343_s3  ;;  %s2821_s12 = scalar_lea.hbm %s3343_s3, %s1104_s27 }
 0x173   : > { %s1632_s20 = scalar_lea.hbm %s2821_s12, 16  ;;  %s1637_s29 = scalar_lea.hbm %s3344_s6, 1024 }
 0x174   : > { %p1633_p8 = scmp.ne.s32.totalorder %s2821_s12, %s1632_s20  ;;  %p1638_p6 = scmp.lt.u32.totalorder %s2821_s12, %s3344_s6 }
 0x175   : > { %p1639_p5 = scmp.lt.u32.totalorder %s1637_s29, %s1632_s20  ;;  %p1641_p12 = scmp.lt.u32.totalorder %s1632_s20, %s2821_s12 }
 0x176   : > { %p1635_p9 = pnand %p1634_p7, %p1633_p8 }
 0x177   : > { %p1640_p3 = por %p1639_p5, %p1638_p6 }
 0x178   : > { %p1636_p13 = pneg %p1635_p9 }
 0x179   : > { %p1642_p11 = por %p1641_p12, %p1640_p3 }
 0x17b   : > { %p1643_p1 = pnand %p1642_p11, %p1636_p13 }
 0x17d   : > { %1646 = shalt.err (!%p1643_p1)
}
 0x17e   : > { %s1647_s27 = scalar_lea.vmem %s2812_s4, 16  ;;  %s2005_s7 = smov [#allocation15]  }
 0x17f   : > { %p1648_p8 = scmp.ne.s32.totalorder %s2812_s4, %s1647_s27  ;;  %s1652_s11 = sshll.u32 %s2005_s7, 4  ;;  %s1653_s11 = int_to_ptr.vmem [resolvable:$false] %s1652_s11 }
 0x180   : > { %s1654_s14 = scalar_lea.vmem %s1653_s11, 32  ;;  %p1655_p4 = scmp.lt.s32.totalorder %s2812_s4, %s1653_s11 }
 0x181   : > { %p1650_p9 = pnand %p1648_p8, %p1634_p7  ;;  %p1656_p6 = scmp.lt.s32.totalorder %s1654_s14, %s1647_s27 }
 0x183   : > { %p1651_p2 = pneg %p1650_p9  ;;  %p1657_p5 = por %p1656_p6, %p1655_p4 }
 0x185   : > { %p1658_p3 = pnand %p1657_p5, %p1651_p2 }
 0x187   : > { %1661 = shalt.err (!%p1658_p3)
}
 0x188   : > { %s3345_s20 = scalar_lea.sflag [#allocation14], %s2281_s16  ;;  %p3346_p4 = scmp.eq.s32.totalorder %s3265_s30, 0 }
 0x189   : > { %1189 = dma.hbm_to_vmem [thread:$0]  (!%p2802_p10), %s2821_s12, 16, %s2812_s4, %s3345_s20  }
 0x18a   : > { %p3347_p2 = scmp.ne.s32.totalorder %s3336_s8, %s3335_s19  ;;  %p3348_p7 = scmp.eq.s32.totalorder %s2224_s25, 0 }
 0x18b   : > { %p3349_p13 = scmp.ne.s32.totalorder %s3335_s19, %s3338_s10  ;;  %s318_s0 = ssub.s32 %s2809_s15, %s2814_s2 }
 0x18c   : > { %p330_p1 = por %p3347_p2, %p3346_p4  ;;  %s321_s23 = sadd.s32 1, %s3336_s8 }
 0x18d   : > { %p2862_p12 = por %p3349_p13, %p3348_p7  ;;  %p319_p11 = scmp.eq.s32.totalorder %s318_s0, 0 }
 0x18e   : > { %s572_s29 = sand.u32 1, %s3336_s8   ;;  %s3480_s17 = smov (!%p330_p1, %s311_s17), 0 }
 0x18f   : > { %s3350_s16 = scalar_select %p2862_p12, 1, 0 }
 0x190   : > { %s1141_s24 = scalar_select %p330_p1, [#allocation3], [#allocation26] }
 0x191   : > { %s3478_s8 = smov (!%p319_p11, %s3336_s8), %s321_s23  ;;  %p3351_p8 = scmp.lt.s32.totalorder %s3265_s30, 2 }
 0x192   : > { %s575_s19 = scalar_lea.vmem [#allocation16], %s572_s29  ;;  %s3355_s3 = sld [smem:[#allocation88_spill]] }
 0x193   : > { %s3482_s24 = smov (!%p3351_p8, %s1141_s24), [#allocation34]  ;;  %p3352_p10 = pmov %p3351_p8 }
 0x194   : > { %p3353_p9 = pmov %p3351_p8  ;;  %s587_s10 = sshll.u32 %s575_s19, 4  ;;  %s2885_s10 = int_to_ptr.vmem [resolvable:$true] %s587_s10 }
 0x195   : > { %s3484_s17 = smov (!%p3352_p10, %s3480_s17), 0  ;;  %s573_s30 = scalar_lea.sflag [#allocation17], %s572_s29 }
 0x196   : > { %p2881_p6 = pnand %p3353_p9, %p330_p1  ;;  %s580_s2 = sld [smem:[%s3482_s24 + %s3484_s17]] }
 0x198   : > { %s3356_s6 = smov %s3355_s3  ;;  %p1664_p3 = pneg %p2881_p6 }
 0x199   : > { %s1667_s14 = scalar_lea.hbm %s3356_s6, 1024 }
 0x19c   : > { %s1106_s4 = sshll.u32 %s580_s2, 4 }
 0x19d   : > { %s2890_s27 = scalar_lea.hbm %s3355_s3, %s1106_s4 }
 0x19e   : > { %s1662_s7 = scalar_lea.hbm %s2890_s27, 16  ;;  %p1668_p1 = scmp.lt.u32.totalorder %s2890_s27, %s3356_s6 }
 0x19f   : > { %p1663_p5 = scmp.ne.s32.totalorder %s2890_s27, %s1662_s7  ;;  %p1669_p7 = scmp.lt.u32.totalorder %s1667_s14, %s1662_s7 }
 0x1a0   : > { %p1671_p11 = scmp.lt.u32.totalorder %s1662_s7, %s2890_s27 }
 0x1a1   : > { %p1665_p4 = pnand %p1664_p3, %p1663_p5  ;;  %p1670_p13 = por %p1669_p7, %p1668_p1 }
 0x1a3   : > { %p1666_p2 = pneg %p1665_p4  ;;  %p1672_p8 = por %p1671_p11, %p1670_p13 }
 0x1a5   : > { %p1673_p10 = pnand %p1672_p8, %p1666_p2 }
 0x1a7   : > { %1676 = shalt.err (!%p1673_p10)
}
 0x1a8   : > { %s1677_s23 = scalar_lea.vmem %s2885_s10, 16  ;;  %s2006_s29 = smov [#allocation16]  }
 0x1a9   : > { %p1678_p9 = scmp.ne.s32.totalorder %s2885_s10, %s1677_s23  ;;  %s1682_s24 = sshll.u32 %s2006_s29, 4  ;;  %s1683_s24 = int_to_ptr.vmem [resolvable:$false] %s1682_s24 }
 0x1aa   : > { %s1684_s2 = scalar_lea.vmem %s1683_s24, 32  ;;  %p1685_p12 = scmp.lt.s32.totalorder %s2885_s10, %s1683_s24 }
 0x1ab   : > { %p1680_p5 = pnand %p1678_p9, %p1664_p3  ;;  %p1686_p1 = scmp.lt.s32.totalorder %s1684_s2, %s1677_s23 }
 0x1ad   : > { %p1681_p4 = pneg %p1680_p5  ;;  %p1687_p7 = por %p1686_p1, %p1685_p12 }
 0x1af   : > { %p1688_p13 = pnand %p1687_p7, %p1681_p4 }
 0x1b1   : > { %1691 = shalt.err (!%p1688_p13)
}
 0x1b2   : > { %1194 = dma.hbm_to_vmem [thread:$0]  (!%p2881_p6), %s2890_s27, 16, %s2885_s10, %s573_s30  }
 0x1b3   : > { %596 = sbr.rel (%p2304_p0) target bundleno = 535 (0x217), region = 56  ;;  %s3357_s19 = sld [smem:[#allocation64_spill]] (!%p2304_p0) }
 0x1b4   : > { %s598_s4 = sand.u32 (!%p2304_p0), 1, %s1980_s5  }
 0x1b5   : > { %s599_s15 = scalar_lea.sflag (!%p2304_p0), [#allocation5], %s598_s4  ;;  %s2920_s28 = scalar_lea.vmem (!%p2304_p0), [#allocation4], %s598_s4 }
 0x1b9   : > { %p3358_p3 = scmp.ne.s32.totalorder (!%p2304_p0), %s3357_s19, 0 }
 0x1bb   : > { %1843 = dma.done.wait (%p3358_p3), %s599_s15, 16  }
 0x1bc   : > { %1845 = vsyncadd (%p3358_p3), %s599_s15, 4294967280  ;;  %s3359_s12 = sld [smem:[#allocation70_spill]]  ;;  %s606_s3 = sand.u32 1, %s2224_s25  }
 0x1bd   : > { %s608_s7 = sand.u32 1, %s1968_s9   ;;  %s607_s10 = scalar_lea.sflag [#allocation8], %s606_s3 }
 0x1be   : > { %s2928_s27 = scalar_lea.vmem [#allocation7], %s608_s7 }
 0x1c2   : > { %p3360_p0 = scmp.ne.s32.totalorder %s3359_s12, 0 }
 0x1c4   : > { %1847 = dma.done.wait (%p3360_p0), %s607_s10, 16  }
 0x1c5   : > { %1849 = vsyncadd (%p3360_p0), %s607_s10, 4294967280  ;;  %s3361_s26 = sld [smem:[#allocation61_spill]]  ;;  %p3362_p12 = scmp.ne.s32.totalorder %s3301_s13, 0 }
 0x1cb   : > { %s616_s30 = sand.u32 1, %s3361_s26  }
 0x1cc   : > { %s2935_s17 = scalar_lea.vmem [#allocation9], %s616_s30 }
 0x1cd   : > { %1851 = dma.done.wait (%p3362_p12), %s607_s10, 16  }
 0x1ce   : > { %1853 = vsyncadd (%p3362_p12), %s607_s10, 4294967280  ;;  %s624_s25 = sand.u32 1, %s1944_s18   ;;  %s623_s11 = scalar_lea.sflag [#allocation11], %s606_s3 }
 0x1cf   : > { %s625_s14 = scalar_lea.vmem [#allocation10], %s624_s25  ;;  %p3363_p6 = scmp.ne.s32.totalorder %s3256_s22, 0 }
 0x1d1   : > { %1855 = dma.done.wait (%p3363_p6), %s623_s11, 16  }
 0x1d2   : > { %1857 = vsyncadd (%p3363_p6), %s623_s11, 4294967280  ;;  %s3364_s20 = sld [smem:[#allocation47_spill]]  ;;  %p3365_p2 = scmp.ne.s32.totalorder %s3318_s21, 0 }
 0x1d8   : > { %s632_s0 = sand.u32 1, %s3364_s20  }
 0x1d9   : > { %s633_s23 = scalar_lea.vmem [#allocation12], %s632_s0 }
 0x1da   : > { %1859 = dma.done.wait (%p3365_p2), %s623_s11, 16  }
 0x1db   : > { %1861 = vsyncadd (%p3365_p2), %s623_s11, 4294967280  ;;  %s3366_s13 = sld [smem:[#allocation56_spill]]  ;;  %s3367_s29 = sld [smem:[#allocation76_spill]] }
 0x1dc   : > { %s639_s2 = scalar_lea.sflag [#allocation14], %s606_s3 }
 0x1e1   : > { %s640_s24 = sand.u32 1, %s3366_s13   ;;  %p3368_p11 = scmp.ne.s32.totalorder %s3367_s29, 0 }
 0x1e2   : > { %s641_s19 = scalar_lea.vmem [#allocation13], %s640_s24 }
 0x1e3   : > { %1863 = dma.done.wait (%p3368_p11), %s639_s2, 16  }
 0x1e4   : > { %1865 = vsyncadd (%p3368_p11), %s639_s2, 4294967280  ;;  %s3369_s22 = sld [smem:[#allocation54_spill]]  ;;  %p3370_p8 = scmp.ne.s32.totalorder %s3334_s1, 0 }
 0x1ea   : > { %s648_s4 = sand.u32 1, %s3369_s22  }
 0x1eb   : > { %s649_s15 = scalar_lea.vmem [#allocation15], %s648_s4 }
 0x1ec   : > { %1867 = dma.done.wait (%p3370_p8), %s639_s2, 16  }
 0x1ed   : > { %1869 = vsyncadd (%p3370_p8), %s639_s2, 4294967280  ;;  %s3371_s21 = sld [smem:[#allocation52_spill]]  ;;  %p3372_p10 = scmp.ne.s32.totalorder %s3350_s16, 0 }
 0x1f3   : > { %s654_s12 = sand.u32 1, %s3371_s21  }
 0x1f4   : > { %s655_s7 = scalar_lea.sflag [#allocation17], %s654_s12  ;;  %s657_s3 = scalar_lea.vmem [#allocation16], %s654_s12 }
 0x1f5   : > { %1871 = dma.done.wait (%p3372_p10), %s655_s7, 16  }
 0x1f6   : > { %1873 = vsyncadd (%p3372_p10), %s655_s7, 4294967280  ;;  %s3373_s10 = sld [smem:[#allocation49_spill]]  ;;  %vm816_vm0 = vcmask 1040384   ;;  %vm818_vm1 = vcmask 1041408   ;;  %vm820_vm2 = vcmask 1042432   ;;  %s3374_s16 = sld [smem:[#allocation66_spill]] }
 0x1f7   : > { %v766_v0 = vld [vmem:[%s2920_s28] sm:$0x1]  ;;  %vm822_vm3 = vcmask 1043456   ;;  %vm824_vm4 = vcmask 1044480   ;;  %vm826_vm5 = vcmask 1045504   ;;  %s3375_s30 = sld [smem:[#allocation72_spill]] }
 0x1f8   : > { %v1109_v1 = vld [vmem:[%s2928_s27] ss:$0 sm:$0xff]  ;;  %vm828_vm6 = vcmask 1046528  }
 0x1f9   : > { %v1110_v2 = vld [vmem:[%s2935_s17] ss:$0 sm:$0xff]  ;;  %v817_v5 = vsel %vm816_vm0, %v766_v0, %v1109_v1  ;;  %s3376_s17 = sld [smem:[#allocation89_spill]] }
 0x1fa   : > { %v1111_v3 = vld [vmem:[%s625_s14] ss:$0 sm:$0xff]  ;;  %v819_v7 = vsel %vm818_vm1, %v817_v5, %v1110_v2 }
 0x1fb   : > { %v1112_v4 = vld [vmem:[%s633_s23] ss:$0 sm:$0xff]  ;;  %v821_v9 = vsel %vm820_vm2, %v819_v7, %v1111_v3  ;;  %s3377_s23 = sld [smem:[#allocation90_spill]] }
 0x1fc   : > { %s720_s26 = sand.u32 1, %s3373_s10   ;;  %v1113_v6 = vld [vmem:[%s641_s19] ss:$0 sm:$0xff]  ;;  %v823_v11 = vsel %vm822_vm3, %v821_v9, %v1112_v4  ;;  %s1117_s14 = sshll.u32 %s3374_s16, 7 }
 0x1fd   : > { %s2969_s1 = sshll.u32 %s720_s26, 3  ;;  %v1114_v8 = vld [vmem:[%s649_s15] ss:$0 sm:$0xff]  ;;  %v825_v12 = vsel %vm824_vm4, %v823_v11, %v1113_v6  ;;  %s834_s29 = scalar_lea.sflag [#allocation6], %s720_s26 }
 0x1fe   : > { %v1115_v10 = vld [vmem:[%s657_s3] ss:$0 sm:$0xff]  ;;  %s722_s25 = scalar_lea.vmem [#allocation18], %s2969_s1  ;;  %v827_v14 = vsel %vm826_vm5, %v825_v12, %v1114_v8  ;;  %p3379_p5 = scmp.ne.s32.totalorder %s3375_s30, 0 }
 0x1ff   : > { %v830_v13 = vld [vmem:[%s3376_s17] sm:$0xff]  ;;  %s848_s11 = sshll.u32 %s722_s25, 4  ;;  %v829_v15 = vsel %vm828_vm6, %v827_v14, %v1115_v10  ;;  %s2007_s19 = smov [#allocation18]   ;;  %s2979_s11 = int_to_ptr.vmem [resolvable:$true] %s848_s11 }
 0x200   : > { %v831_v16 = vadd.f32 %v830_v13, %v829_v15  ;;  %s1692_s24 = scalar_lea.vmem %s2979_s11, 128  ;;  %s1696_s22 = sshll.u32 %s2007_s19, 4  ;;  %s1697_s22 = int_to_ptr.vmem [resolvable:$false] %s1696_s22 }
 0x201   : > { %s3378_s2 = smov %s3377_s23  ;;  %s2984_s13 = scalar_lea.hbm %s3377_s23, %s1117_s14 }
 0x202   : > { %832 = vst [vmem:[%s722_s25] sm:$0xff] %v831_v16  ;;  %p1693_p9 = scmp.ne.s32.totalorder %s2979_s11, %s1692_s24  ;;  %s1698_s4 = scalar_lea.vmem %s1697_s22, 256 }
 0x203   : > { %p1699_p7 = scmp.lt.s32.totalorder %s2979_s11, %s1697_s22  ;;  %p1700_p13 = scmp.lt.s32.totalorder %s1698_s4, %s1692_s24 }
 0x204   : > { %p1694_p4 = pnand %p1693_p9, %p3379_p5 }
 0x205   : > { %p1701_p3 = por %p1700_p13, %p1699_p7 }
 0x206   : > { %p1695_p1 = pneg %p1694_p4 }
 0x208   : > { %p1702_p0 = pnand %p1701_p3, %p1695_p1 }
 0x20a   : > { %1705 = shalt.err (!%p1702_p0)
}
 0x20b   : > { %s1706_s15 = scalar_lea.hbm %s2984_s13, 128  ;;  %s1710_s7 = scalar_lea.hbm %s3378_s2, 256 }
 0x20c   : > { %p1707_p12 = scmp.ne.s32.totalorder %s2984_s13, %s1706_s15  ;;  %p1711_p11 = scmp.lt.u32.totalorder %s2984_s13, %s3378_s2 }
 0x20d   : > { %p1712_p8 = scmp.lt.u32.totalorder %s1710_s7, %s1706_s15  ;;  %p1714_p9 = scmp.lt.u32.totalorder %s1706_s15, %s2984_s13 }
 0x20e   : > { %p1708_p6 = pnand %p1707_p12, %p3379_p5 }
 0x20f   : > { %p1713_p10 = por %p1712_p8, %p1711_p11 }
 0x210   : > { %p1709_p2 = pneg %p1708_p6 }
 0x211   : > { %p1715_p4 = por %p1714_p9, %p1713_p10 }
 0x213   : > { %p1716_p1 = pnand %p1715_p4, %p1709_p2 }
 0x215   : > { %1719 = shalt.err (!%p1716_p1)
}
 0x216   : > { %1152 = dma.vmem_to_hbm [thread:$0]  (%p3379_p5), %s2979_s11, 128, %s2984_s13, %s834_s29  }
 0x217 PF: > { %s3380_s26 = sld [smem:[#allocation45_spill]]  ;;  %s3381_s1 = sld [smem:[#allocation73_spill]] }
 0x218   : > { %s3382_s4 = sld [smem:[#allocation68_spill]] }
 0x21d   : > { %s860_s16 = sand.u32 1, %s3380_s26   ;;  %p3383_p7 = scmp.ne.s32.totalorder %s3381_s1, 0 }
 0x21e   : > { %p3384_p13 = scmp.ge.s32.totalorder %s3382_s4, 2  ;;  %s861_s28 = scalar_lea.sflag [#allocation6], %s860_s16 }
 0x220   : > { %p1196_p3 = pnand %p3384_p13, %p3383_p7 }
 0x222   : > { %1875 = dma.done.wait (!%p1196_p3), %s861_s28, 128  }
 0x223   : > { %1877 = vsyncadd (!%p1196_p3), %s861_s28, 4294967168  ;;  %s3191_s2 = sadd.s32 1, %s3382_s4   ;;  %s3385_s23 = sld [smem:[#allocation49_spill]] }
 0x224   : > { %s3386_s24 = sld [smem:[#allocation50_spill]]  ;;  %s3387_s0 = sld [smem:[#allocation71_spill]] }
 0x225   : > { %s3388_s25 = sld [smem:[#allocation52_spill]]  ;;  %s3389_s26 = sld [smem:[#allocation53_spill]] }
 0x226   : > { %s3390_s28 = sld [smem:[#allocation54_spill]]  ;;  %s3391_s29 = sld [smem:[#allocation55_spill]] }
 0x227   : > { %s3392_s30 = sld [smem:[#allocation46_spill]]  ;;  %s3393_s11 = sld [smem:[#allocation56_spill]] }
 0x228   : > { %s3394_s12 = sld [smem:[#allocation57_spill]]  ;;  %s3395_s13 = sld [smem:[#allocation77_spill]] }
 0x229   : > { %s3396_s14 = sld [smem:[#allocation47_spill]]  ;;  %s3397_s15 = sld [smem:[#allocation48_spill]] }
 0x22a   : > { %s3398_s16 = sld [smem:[#allocation80_spill]]  ;;  %p3017_p5 = scmp.ge.s32.totalorder %s3191_s2, 4  }
 0x22b   : > { %s3401_s20 = sld [smem:[#allocation59_spill]]  ;;  %s3402_s19 = sld [smem:[#allocation75_spill]] }
 0x22c   : > { %s3403_s22 = sld [smem:[#allocation61_spill]]  ;;  %s3404_s21 = sld [smem:[#allocation62_spill]] }
 0x22d   : > { %s3405_s7 = sld [smem:[#allocation79_spill]]  ;;  %s3406_s27 = smov %s3478_s8 }
 0x22e   : > { %s3407_s3 = sld [smem:[#allocation63_spill]]  ;;  %3408 = sst [smem:[#allocation45_spill]] %s3391_s29 }
 0x22f   : > { %s3409_s8 = sld [smem:[#allocation74_spill]]  ;;  %s3410_s1 = sld [smem:[#allocation65_spill]] }
 0x230   : > { %s3411_s2 = sld [smem:[#allocation78_spill]]  ;;  %s3412_s6 = sld [smem:[#allocation67_spill]] }
 0x231   : > { %s3413_s4 = sld [smem:[#allocation69_spill]]  ;;  %s3414_s10 = sld [smem:[#allocation68_spill]] }
 0x232   : > { %s3416_s17 = smov %s1944_s18  ;;  %s3417_s18 = smov %s3401_s20 }
 0x233   : > { %s3418_s20 = smov %s3403_s22  ;;  %s3419_s22 = smov %s3405_s7 }
 0x234   : > { %3420 = sst [smem:[#allocation46_spill]] %s1968_s9  ;;  %s3421_s9 = smov %s3407_s3 }
 0x235   : > { %s3422_s7 = smov %s1980_s5  ;;  %s3423_s5 = smov %s3410_s1 }
 0x236   : > { %s3424_s3 = smov %s3411_s2  ;;  %s3425_s1 = smov %s3412_s6 }
 0x237   : > { %3426 = sst [smem:[#allocation47_spill]] %s3413_s4  ;;  %s3427_s4 = sadd.s32 1, %s3414_s10  }
 0x238   : > { %3428 = sst [smem:[#allocation48_spill]] %s3427_s4  ;;  %41 = sbr.rel (!%p3017_p5) target bundleno = 46 (0x2e), region = 189 }
 0x23f   :  { %866 = vsyncpa [#allocation5], 1 }
 0x240   :  { %868 = vsyncpa [#allocation5 + $0x1], 1 }
 0x241   :  { %869 = vsyncpa [#allocation8], 1 }
 0x242   :  { %871 = vsyncpa [#allocation8 + $0x1], 1 }
 0x243   :  { %872 = vsyncpa [#allocation11], 1 }
 0x244   :  { %874 = vsyncpa [#allocation11 + $0x1], 1 }
 0x245   :  { %875 = vsyncpa [#allocation14], 1 }
 0x246   :  { %877 = vsyncpa [#allocation14 + $0x1], 1 }
 0x247   :  { %878 = vsyncpa [#allocation17], 1 }
 0x248   :  { %880 = vsyncpa [#allocation17 + $0x1], 1 }
 0x249   :  { %881 = vsyncpa [#allocation6], 1 }
 0x24a   :  { %883 = vsyncpa [#allocation6 + $0x1], 1 }

</bundles_post_ra>
